<compile_context>
chip_gen: v5e
topology: v5e:2x2
jax: 0.10.0
libtpu: 0.0.40
codegen_flags: <defaults>
</compile_context>

<pallas_src>
import functools

import jax
import jax.numpy as jnp
from jax import lax
from jax.experimental import pallas as pl
from jax.experimental.pallas import tpu as pltpu


def _round_up(x, m):
    return ((x + m - 1) // m) * m


def _intra_loss_kernel(a_ref, b_ref, out_ref, acc_ref, *,
                       up, down, n_valid, tm, tn, padded):
    """Grid (i, j): (tm, tn) tile of the Gram matrix. j is the reduction
    axis (sequential); i is parallel, each stripe emits its own partial."""
    i = pl.program_id(0)
    j = pl.program_id(1)

    @pl.when(j == 0)
    def _():
        acc_ref[...] = jnp.zeros_like(acc_ref)

    # (tm, D) x (tn, D) contracted on D -> (tm, tn).  Feeds the MXU with
    # the contraction on the lane dim directly (no transpose of the tile)
    # and accumulates in f32 regardless of the input dtype.
    s = lax.dot_general(
        a_ref[...], b_ref[...],
        dimension_numbers=(((1,), (1,)), ((), ())),
        preferred_element_type=jnp.float32)

    row = lax.broadcasted_iota(jnp.int32, s.shape, 0) + i * tm
    col = lax.broadcasted_iota(jnp.int32, s.shape, 1) + j * tn
    diag = row == col

    if padded:
        valid = (row < n_valid) & (col < n_valid)
        s = jnp.where(valid & diag, s - 1.0, s)
        keep = valid & (s > up) & (s < (1.0 - down))
    else:
        s = jnp.where(diag, s - 1.0, s)
        keep = (s > up) & (s < (1.0 - down))

    # Fused mask (equivalent to the two sequential float-cast multiplies in
    # the PyTorch forward: failing either test yields 0 in both versions).
    acc_ref[...] += jnp.where(keep, s, 0.0)

    @pl.when(j == pl.num_programs(1) - 1)
    def _():
        out_ref[0, 0] = jnp.sum(acc_ref[...])


def intra_loss_cosine(mx, *, up=0.5, down=0.05, lamb=1.0, block=256):
    """IntraLoss forward (measure='cosine'). mx: (N, D). Returns scalar f32."""
    N, D = mx.shape

    # 128-aligned square tiles (>=128 keeps the MXU fed and satisfies the
    # (8,128) / bf16 (16,128) sublane-lane tiling constraints).
    t = min(int(block), _round_up(N, 128))
    t = _round_up(t, 128)
    n_pad = _round_up(N, t)
    padded = n_pad != N
    if padded:
        mx = jnp.pad(mx, ((0, n_pad - N), (0, 0)))

    tm = tn = t
    num_i = n_pad // tm
    num_j = n_pad // tn

    kernel = functools.partial(
        _intra_loss_kernel, up=float(up), down=float(down),
        n_valid=N, tm=tm, tn=tn, padded=padded)

    # Double-buffered input blocks + f32 accumulator tile, with headroom.
    itemsize = jnp.dtype(mx.dtype).itemsize
    vmem_est = 2 * (tm + tn) * D * itemsize + tm * tn * 4 + (2 << 20)
    vmem_limit = min(100 * 1024 * 1024,
                     max(32 * 1024 * 1024, int(vmem_est * 2)))

    partials = pl.pallas_call(
        kernel,
        out_shape=jax.ShapeDtypeStruct((num_i, 1), jnp.float32),
        grid_spec=pltpu.PrefetchScalarGridSpec(
            num_scalar_prefetch=0,
            grid=(num_i, num_j),
            in_specs=[
                # row stripe of mx
                pl.BlockSpec((tm, D), lambda i, j: (i, 0)),
                # column stripe of mx (streamed, not resident)
                pl.BlockSpec((tn, D), lambda i, j: (j, 0)),
            ],
            # per-row-stripe partial sum -> no shared accumulator across the
            # parallel axis (race-free on megacore).
            out_specs=pl.BlockSpec((1, 1), lambda i, j: (i, 0),
                                   memory_space=pltpu.SMEM),
            scratch_shapes=[pltpu.VMEM((tm, tn), jnp.float32)],
        ),
        compiler_params=pltpu.CompilerParams(
            dimension_semantics=("parallel", "arbitrary"),
            vmem_limit_bytes=vmem_limit),
    )(mx, mx)

    return jnp.float32(lamb) * jnp.sum(partials) / jnp.float32(N)


def _reference(mx, up=0.5, down=0.05, lamb=1.0):
    x = mx.astype(jnp.float32)
    scores = jnp.dot(x, x.T, precision=lax.Precision.HIGHEST)
    n = scores.shape[0]
    s = scores - jnp.eye(n, dtype=jnp.float32)
    s = s * (s > up).astype(jnp.float32)
    s = s * (s < 1.0 - down).astype(jnp.float32)
    return lamb * jnp.sum(s) / n


if __name__ == "__main__":
    key = jax.random.PRNGKey(0)
    k1, k2 = jax.random.split(key)

    # Case 1: small, non-tile-aligned N -> exercises the zero-padding path.
    N1, D1 = 48, 32
    mx1 = jax.random.normal(k1, (N1, D1), dtype=jnp.float32)
    mx1 = mx1 / jnp.linalg.norm(mx1, axis=-1, keepdims=True)
    loss1 = jax.block_until_ready(intra_loss_cosine(mx1, up=0.5, down=0.05,
                                                    lamb=1.0))
    ref1 = _reference(mx1, up=0.5, down=0.05, lamb=1.0)
    assert jnp.allclose(loss1, ref1, atol=1e-3, rtol=1e-4), (loss1, ref1)

    # Case 2: tile-aligned N, multi-tile 2-D grid (no padding path).
    N2, D2 = 256, 64
    mx2 = jax.random.normal(k2, (N2, D2), dtype=jnp.float32)
    mx2 = mx2 / jnp.linalg.norm(mx2, axis=-1, keepdims=True)
    loss2 = jax.block_until_ready(intra_loss_cosine(mx2, up=0.5, down=0.05,
                                                    lamb=1.0, block=128))
    ref2 = _reference(mx2, up=0.5, down=0.05, lamb=1.0)
    assert jnp.allclose(loss2, ref2, atol=1e-3, rtol=1e-4), (loss2, ref2)

    print("KERNEL_OK")
</pallas_src>

<mosaic_0001>
module attributes {stable_mosaic.version = 11 : i64} {
  func.func @_intra_loss_kernel(%arg0: i32, %arg1: i32, %arg2: memref<128x32xf32, #tpu.memory_space<vmem>>, %arg3: memref<128x32xf32, #tpu.memory_space<vmem>>, %arg4: memref<1x1xf32, #tpu.memory_space<smem>>, %arg5: memref<128x128xf32, #tpu.memory_space<vmem>>) attributes {dimension_semantics = [#tpu.dimension_semantics<parallel>, #tpu.dimension_semantics<arbitrary>], iteration_bounds = array<i64: 1, 1>, scalar_prefetch = 0 : i64, scratch_operands = 1 : i64, tpu.core_type = #tpu.core_type<tc>, window_params = [{transform_indices = @transform_0, window_bounds = array<i64: 128, 32>}, {transform_indices = @transform_1, window_bounds = array<i64: 128, 32>}, {transform_indices = @transform_2, window_bounds = array<i64: 1, 1>}]} {
    %c0_i32 = arith.constant 0 : i32
    %0 = arith.cmpi eq, %arg1, %c0_i32 : i32
    %1 = arith.extui %0 : i1 to i32
    %c0_i32_0 = arith.constant 0 : i32
    %2 = arith.cmpi ne, %1, %c0_i32_0 : i32
    scf.if %2 {
      %cst_16 = arith.constant 0.000000e+00 : f32
      %38 = vector.broadcast %cst_16 : f32 to vector<128x128xf32>
      %c0_17 = arith.constant 0 : index
      %c0_18 = arith.constant 0 : index
      %39 = vector.load %arg5[%c0_17, %c0_18] : memref<128x128xf32, #tpu.memory_space<vmem>>, vector<128x128xf32>
      tpu.vector_store %arg5[%c0_17, %c0_18], %38 {strides = array<i32>} : memref<128x128xf32, #tpu.memory_space<vmem>>, vector<128x128xf32>,
    } else {
    }
    %c0 = arith.constant 0 : index
    %c0_1 = arith.constant 0 : index
    %3 = vector.load %arg2[%c0, %c0_1] : memref<128x32xf32, #tpu.memory_space<vmem>>, vector<128x32xf32>
    %c0_2 = arith.constant 0 : index
    %c0_3 = arith.constant 0 : index
    %4 = vector.load %arg3[%c0_2, %c0_3] : memref<128x32xf32, #tpu.memory_space<vmem>>, vector<128x32xf32>
    %cst = arith.constant dense<0.000000e+00> : vector<128x128xf32>
    %5 = tpu.matmul %3, %4, %cst {dimension_numbers = #tpu.dot_dimension_numbers<[1], [1], [0], [0], [0, 0, 1, 0], [], []>} : vector<128x32xf32>, vector<128x32xf32>, vector<128x128xf32> -> vector<128x128xf32>
    %6 = tpu.iota {dimensions = array<i32: 0>} : vector<128x128xi32>
    %c128_i32 = arith.constant 128 : i32
    %7 = arith.muli %arg0, %c128_i32 : i32
    %8 = vector.broadcast %7 : i32 to vector<128x128xi32>
    %9 = arith.addi %6, %8 : vector<128x128xi32>
    %10 = tpu.iota {dimensions = array<i32: 1>} : vector<128x128xi32>
    %c128_i32_4 = arith.constant 128 : i32
    %11 = arith.muli %arg1, %c128_i32_4 : i32
    %12 = vector.broadcast %11 : i32 to vector<128x128xi32>
    %13 = arith.addi %10, %12 : vector<128x128xi32>
    %14 = arith.cmpi eq, %9, %13 : vector<128x128xi32>
    %c48_i32 = arith.constant 48 : i32
    %15 = vector.broadcast %c48_i32 : i32 to vector<128x128xi32>
    %16 = arith.cmpi slt, %9, %15 : vector<128x128xi32>
    %c48_i32_5 = arith.constant 48 : i32
    %17 = vector.broadcast %c48_i32_5 : i32 to vector<128x128xi32>
    %18 = arith.cmpi slt, %13, %17 : vector<128x128xi32>
    %19 = arith.andi %16, %18 : vector<128x128xi1>
    %20 = arith.andi %19, %14 : vector<128x128xi1>
    %cst_6 = arith.constant 1.000000e+00 : f32
    %21 = vector.broadcast %cst_6 : f32 to vector<128x128xf32>
    %22 = arith.subf %5, %21 : vector<128x128xf32>
    %23 = arith.select %20, %22, %5 : vector<128x128xi1>, vector<128x128xf32>
    %cst_7 = arith.constant 5.000000e-01 : f32
    %24 = vector.broadcast %cst_7 : f32 to vector<128x128xf32>
    %25 = arith.cmpf ogt, %23, %24 : vector<128x128xf32>
    %26 = arith.andi %19, %25 : vector<128x128xi1>
    %cst_8 = arith.constant 0.949999988 : f32
    %27 = vector.broadcast %cst_8 : f32 to vector<128x128xf32>
    %28 = arith.cmpf olt, %23, %27 : vector<128x128xf32>
    %29 = arith.andi %26, %28 : vector<128x128xi1>
    %c0_9 = arith.constant 0 : index
    %c0_10 = arith.constant 0 : index
    %30 = vector.load %arg5[%c0_9, %c0_10] : memref<128x128xf32, #tpu.memory_space<vmem>>, vector<128x128xf32>
    %cst_11 = arith.constant 0.000000e+00 : f32
    %31 = vector.broadcast %cst_11 : f32 to vector<128x128xf32>
    %32 = arith.select %29, %23, %31 : vector<128x128xi1>, vector<128x128xf32>
    %33 = arith.addf %30, %32 : vector<128x128xf32>
    %c0_12 = arith.constant 0 : index
    %c0_13 = arith.constant 0 : index
    %34 = vector.load %arg5[%c0_12, %c0_13] : memref<128x128xf32, #tpu.memory_space<vmem>>, vector<128x128xf32>
    tpu.vector_store %arg5[%c0_12, %c0_13], %33 {strides = array<i32>} : memref<128x128xf32, #tpu.memory_space<vmem>>, vector<128x128xf32>,
    %c0_i32_14 = arith.constant 0 : i32
    %35 = arith.cmpi eq, %arg1, %c0_i32_14 : i32
    %36 = arith.extui %35 : i1 to i32
    %c0_i32_15 = arith.constant 0 : i32
    %37 = arith.cmpi ne, %36, %c0_i32_15 : i32
    scf.if %37 {
      %c0_16 = arith.constant 0 : index
      %c0_17 = arith.constant 0 : index
      %38 = vector.load %arg5[%c0_16, %c0_17] : memref<128x128xf32, #tpu.memory_space<vmem>>, vector<128x128xf32>
      %39 = vector.shape_cast %38 : vector<128x128xf32> to vector<1x128x128xf32>
      %cst_18 = arith.constant dense<0.000000e+00> : vector<1xf32>
      %40 = vector.multi_reduction <add>, %39, %cst_18 [1, 2] : vector<1x128x128xf32> to vector<1xf32>
      %41 = vector.shape_cast %40 : vector<1xf32> to vector<1x1x1xf32>
      %42 = vector.extract %41[0, 0, 0] : f32 from vector<1x1x1xf32>
      %c0_19 = arith.constant 0 : index
      %c0_20 = arith.constant 0 : index
      %43 = memref.load %arg4[%c0_19, %c0_20] : memref<1x1xf32, #tpu.memory_space<smem>>
      memref.store %42, %arg4[%c0_19, %c0_20] : memref<1x1xf32, #tpu.memory_space<smem>>
    } else {
    }
    return
  }
  func.func @transform_0(%arg0: i32, %arg1: i32) -> (i32, i32) {
    %c0_i32 = arith.constant 0 : i32
    %c0_i32_0 = arith.constant 0 : i32
    return %arg0, %c0_i32 : i32, i32
  }
  func.func @transform_1(%arg0: i32, %arg1: i32) -> (i32, i32) {
    %c0_i32 = arith.constant 0 : i32
    %c0_i32_0 = arith.constant 0 : i32
    return %arg1, %c0_i32 : i32, i32
  }
  func.func @transform_2(%arg0: i32, %arg1: i32) -> (i32, i32) {
    %c0_i32 = arith.constant 0 : i32
    %c0_i32_0 = arith.constant 0 : i32
    return %arg0, %c0_i32 : i32, i32
  }
}

</mosaic_0001>

<bundles_post_ra>
// kernel: tpu_custom_call.1
= control target key start
LH: loop header
LB: loop body
LE: loop exit
PB: predicated region body
PF: predicated region fallthrough
CT: control target
= control target key end

     0   :  { %vm64_vm0 = vcmask 261120   ;;  %s934_s0 = inlined_call_operand.vmem [shape: f32[128,32], index: 0, kind: input, shape index: {}]   ;;  %s935_s1 = inlined_call_operand.vmem [shape: f32[128,32], index: 1, kind: input, shape index: {}]   ;;  %s936_s2 = inlined_call_operand.hbm [shape: f32[1,1], index: 2, kind: output, shape index: {}]  }
   0x1   :  { %v63_v0 = vld [vmem:[%s935_s1 + $0x78] sm:$0xff]  ;;  %v62_v1 = vld [vmem:[%s935_s1 + $0x70] sm:$0xff] }
   0x2   :  { %551 = vmatpush.xpose.msk.msra.mxu0 %vm64_vm0, %v63_v0  ;;  %599 = vmatpush.xpose.msk.msra.mxu1 %vm64_vm0, %v63_v0 }
   0x3   :  { %600 = vmatpush.xpose.msk.msra.mxu2 %vm64_vm0, %v63_v0  ;;  %601 = vmatpush.xpose.msk.msra.mxu3 %vm64_vm0, %v63_v0 }
   0x4   :  { %7 = vsyncpa [#allocation4], 0  ;;  %v61_v2 = vld [vmem:[%s935_s1 + $0x68] sm:$0xff]  ;;  %v60_v3 = vld [vmem:[%s935_s1 + $0x60] sm:$0xff]  ;;  %v226_v22 = vlaneseq  ;;  %s664_s18 = smov [#allocation3]  }
   0x5   :  { %v59_v4 = vld [vmem:[%s935_s1 + $0x58] sm:$0xff]  ;;  %v58_v5 = vld [vmem:[%s935_s1 + $0x50] sm:$0xff]  ;;  %v57_v6 = vld [vmem:[%s935_s1 + $0x48] sm:$0xff] }
   0x6   :  { %552 = vmatpush.xpose.msk.msra.mxu0 %vm64_vm0, %v62_v1  ;;  %602 = vmatpush.xpose.msk.msra.mxu1 %vm64_vm0, %v62_v1  ;;  %v56_v7 = vld [vmem:[%s935_s1 + $0x40] sm:$0xff]  ;;  %v55_v8 = vld [vmem:[%s935_s1 + $0x38] sm:$0xff]  ;;  %v54_v9 = vld [vmem:[%s935_s1 + $0x30] sm:$0xff]  ;;  %v227_v24 = vshrl.u32 %v226_v22, 7  ;;  %v816_v25 = vand.u32 127, %v226_v22 }
   0x7   :  { %603 = vmatpush.xpose.msk.msra.mxu2 %vm64_vm0, %v62_v1  ;;  %604 = vmatpush.xpose.msk.msra.mxu3 %vm64_vm0, %v62_v1  ;;  %v53_v10 = vld [vmem:[%s935_s1 + $0x28] sm:$0xff]  ;;  %v52_v11 = vld [vmem:[%s935_s1 + $0x20] sm:$0xff]  ;;  %v51_v12 = vld [vmem:[%s935_s1 + $0x18] sm:$0xff] }
   0x8   :  { %v50_v13 = vld [vmem:[%s935_s1 + $0x10] sm:$0xff]  ;;  %v49_v14 = vld [vmem:[%s935_s1 + $0x8] sm:$0xff]  ;;  %v48_v15 = vld [vmem:[%s935_s1] sm:$0xff]  ;;  %v228_v26 = vadd.s32 8, %v227_v24  ;;  %vm266_vm1 = vcmp.eq.s32.totalorder %v227_v24, %v816_v25  ;;  %vm298_vm2 = vcmp.lt.s32.totalorder %v816_v25, 48  ;;  %v231_v31 = vadd.s32 32, %v227_v24 }
   0x9   :  { %v32_v16 = vld [vmem:[%s934_s0] sm:$0xff]  ;;  %v33_v18 = vld [vmem:[%s934_s0 + $0x8] sm:$0xff]  ;;  %v34_v20 = vld [vmem:[%s934_s0 + $0x10] sm:$0xff]  ;;  %v229_v33 = vadd.s32 16, %v227_v24  ;;  %v232_v35 = vadd.s32 40, %v227_v24  ;;  %v230_v38 = vadd.s32 24, %v227_v24 }
   0xa   :  { %553 = vmatpush.xpose.msk.msra.mxu0 %vm64_vm0, %v61_v2  ;;  %605 = vmatpush.xpose.msk.msra.mxu1 %vm64_vm0, %v61_v2  ;;  %v36_v17 = vld [vmem:[%s934_s0 + $0x20] sm:$0xff]  ;;  %v37_v19 = vld [vmem:[%s934_s0 + $0x28] sm:$0xff]  ;;  %v35_v21 = vld [vmem:[%s934_s0 + $0x18] sm:$0xff]  ;;  %vm267_vm3 = vcmp.eq.s32.totalorder %v228_v26, %v816_v25  ;;  %vm270_vm6 = vcmp.eq.s32.totalorder %v231_v31, %v816_v25  ;;  %s541_s1 = sshll.u32 %s936_s2, 4  ;;  %s542_s1 = int_to_ptr.hbm [resolvable:$true] %s541_s1 }
   0xb   :  { %606 = vmatpush.xpose.msk.msra.mxu2 %vm64_vm0, %v61_v2  ;;  %607 = vmatpush.xpose.msk.msra.mxu3 %vm64_vm0, %v61_v2  ;;  %v40_v28 = vld [vmem:[%s934_s0 + $0x40] sm:$0xff]  ;;  %vm315_vm4 = vmand %vm298_vm2, %vm266_vm1  ;;  %v38_v36 = vld [vmem:[%s934_s0 + $0x30] sm:$0xff]  ;;  %vm268_vm7 = vcmp.eq.s32.totalorder %v229_v33, %v816_v25  ;;  %vm271_vm8 = vcmp.eq.s32.totalorder %v232_v35, %v816_v25  ;;  %vm269_vm12 = vcmp.eq.s32.totalorder %v230_v38, %v816_v25 }
   0xc   :  { %v44_v29 = vld [vmem:[%s934_s0 + $0x60] sm:$0xff]  ;;  %vm316_vm5 = vmand %vm298_vm2, %vm267_vm3  ;;  %v41_v39 = vld [vmem:[%s934_s0 + $0x48] sm:$0xff] }
   0xd   :  { %v45_v40 = vld [vmem:[%s934_s0 + $0x68] sm:$0xff]  ;;  %vm319_vm10 = vmand %vm298_vm2, %vm270_vm6  ;;  %v39_v45 = vld [vmem:[%s934_s0 + $0x38] sm:$0xff] }
   0xe   :  { %554 = vmatpush.xpose.msk.msra.mxu0 %vm64_vm0, %v60_v3  ;;  %608 = vmatpush.xpose.msk.msra.mxu1 %vm64_vm0, %v60_v3  ;;  %vm850_vm11 = vmand %vm298_vm2, %vm268_vm7  ;;  %v42_v54 = vld [vmem:[%s934_s0 + $0x50] sm:$0xff] }
   0xf   :  { %609 = vmatpush.xpose.msk.msra.mxu2 %vm64_vm0, %v60_v3  ;;  %610 = vmatpush.xpose.msk.msra.mxu3 %vm64_vm0, %v60_v3  ;;  %vm862_vm14 = vmand %vm298_vm2, %vm271_vm8  ;;  %v46_v55 = vld [vmem:[%s934_s0 + $0x70] sm:$0xff]  ;;  %v43_v3 = vld [vmem:[%s934_s0 + $0x58] sm:$0xff] }
  0x10   :  { %vm870_vm3 = vmand %vm298_vm2, %vm269_vm12 }
  0x12   :  { %555 = vmatpush.xpose.msk.msra.mxu0 %vm64_vm0, %v59_v4  ;;  %611 = vmatpush.xpose.msk.msra.mxu1 %vm64_vm0, %v59_v4 }
  0x13   :  { %612 = vmatpush.xpose.msk.msra.mxu2 %vm64_vm0, %v59_v4  ;;  %613 = vmatpush.xpose.msk.msra.mxu3 %vm64_vm0, %v59_v4  ;;  %v47_v4 = vld [vmem:[%s934_s0 + $0x78] sm:$0xff] }
  0x16   :  { %556 = vmatpush.xpose.msk.msra.mxu0 %vm64_vm0, %v58_v5  ;;  %614 = vmatpush.xpose.msk.msra.mxu1 %vm64_vm0, %v58_v5 }
  0x17   :  { %615 = vmatpush.xpose.msk.msra.mxu2 %vm64_vm0, %v58_v5  ;;  %616 = vmatpush.xpose.msk.msra.mxu3 %vm64_vm0, %v58_v5 }
  0x1a   :  { %557 = vmatpush.xpose.msk.msra.mxu0 %vm64_vm0, %v57_v6  ;;  %617 = vmatpush.xpose.msk.msra.mxu1 %vm64_vm0, %v57_v6 }
  0x1b   :  { %618 = vmatpush.xpose.msk.msra.mxu2 %vm64_vm0, %v57_v6  ;;  %619 = vmatpush.xpose.msk.msra.mxu3 %vm64_vm0, %v57_v6 }
  0x1e   :  { %558 = vmatpush.xpose.msk.msra.mxu0 %vm64_vm0, %v56_v7  ;;  %620 = vmatpush.xpose.msk.msra.mxu1 %vm64_vm0, %v56_v7 }
  0x1f   :  { %621 = vmatpush.xpose.msk.msra.mxu2 %vm64_vm0, %v56_v7  ;;  %622 = vmatpush.xpose.msk.msra.mxu3 %vm64_vm0, %v56_v7 }
  0x22   :  { %559 = vmatpush.xpose.msk.msra.mxu0 %vm64_vm0, %v55_v8  ;;  %623 = vmatpush.xpose.msk.msra.mxu1 %vm64_vm0, %v55_v8 }
  0x23   :  { %624 = vmatpush.xpose.msk.msra.mxu2 %vm64_vm0, %v55_v8  ;;  %625 = vmatpush.xpose.msk.msra.mxu3 %vm64_vm0, %v55_v8 }
  0x26   :  { %560 = vmatpush.xpose.msk.msra.mxu0 %vm64_vm0, %v54_v9  ;;  %626 = vmatpush.xpose.msk.msra.mxu1 %vm64_vm0, %v54_v9 }
  0x27   :  { %627 = vmatpush.xpose.msk.msra.mxu2 %vm64_vm0, %v54_v9  ;;  %628 = vmatpush.xpose.msk.msra.mxu3 %vm64_vm0, %v54_v9 }
  0x2a   :  { %561 = vmatpush.xpose.msk.msra.mxu0 %vm64_vm0, %v53_v10  ;;  %629 = vmatpush.xpose.msk.msra.mxu1 %vm64_vm0, %v53_v10 }
  0x2b   :  { %630 = vmatpush.xpose.msk.msra.mxu2 %vm64_vm0, %v53_v10  ;;  %631 = vmatpush.xpose.msk.msra.mxu3 %vm64_vm0, %v53_v10 }
  0x2e   :  { %562 = vmatpush.xpose.msk.msra.mxu0 %vm64_vm0, %v52_v11  ;;  %632 = vmatpush.xpose.msk.msra.mxu1 %vm64_vm0, %v52_v11 }
  0x2f   :  { %633 = vmatpush.xpose.msk.msra.mxu2 %vm64_vm0, %v52_v11  ;;  %634 = vmatpush.xpose.msk.msra.mxu3 %vm64_vm0, %v52_v11 }
  0x32   :  { %563 = vmatpush.xpose.msk.msra.mxu0 %vm64_vm0, %v51_v12  ;;  %635 = vmatpush.xpose.msk.msra.mxu1 %vm64_vm0, %v51_v12 }
  0x33   :  { %636 = vmatpush.xpose.msk.msra.mxu2 %vm64_vm0, %v51_v12  ;;  %637 = vmatpush.xpose.msk.msra.mxu3 %vm64_vm0, %v51_v12 }
  0x36   :  { %564 = vmatpush.xpose.msk.msra.mxu0 %vm64_vm0, %v50_v13  ;;  %638 = vmatpush.xpose.msk.msra.mxu1 %vm64_vm0, %v50_v13 }
  0x37   :  { %639 = vmatpush.xpose.msk.msra.mxu2 %vm64_vm0, %v50_v13  ;;  %640 = vmatpush.xpose.msk.msra.mxu3 %vm64_vm0, %v50_v13 }
  0x3a   :  { %565 = vmatpush.xpose.msk.msra.mxu0 %vm64_vm0, %v49_v14  ;;  %641 = vmatpush.xpose.msk.msra.mxu1 %vm64_vm0, %v49_v14 }
  0x3b   :  { %642 = vmatpush.xpose.msk.msra.mxu2 %vm64_vm0, %v49_v14  ;;  %643 = vmatpush.xpose.msk.msra.mxu3 %vm64_vm0, %v49_v14 }
  0x3e   :  { %566 = vmatpush.xpose.msk.msra.mxu0 %vm64_vm0, %v48_v15  ;;  %644 = vmatpush.xpose.msk.msra.mxu1 %vm64_vm0, %v48_v15 }
  0x3f   :  { %645 = vmatpush.xpose.msk.msra.mxu2 %vm64_vm0, %v48_v15  ;;  %646 = vmatpush.xpose.msk.msra.mxu3 %vm64_vm0, %v48_v15 }
  0x41   :  { %567 = vmatmul.msk.f32.vlgmr.msra.gmra.mxu0 %vm64_vm0, %v32_v16  ;;  %571 = vmatmul.msk.f32.vlgmr.msra.gmra.mxu1 %vm64_vm0, %v36_v17 }
  0x42   :  { %575 = vmatmul.msk.f32.vlgmr.msra.gmra.mxu2 %vm64_vm0, %v40_v28  ;;  %579 = vmatmul.msk.f32.vlgmr.msra.gmra.mxu3 %vm64_vm0, %v44_v29 }
  0x49   :  { %568 = vmatmul.msk.f32.gmra.mxu0 %vm64_vm0, %v33_v18  ;;  %572 = vmatmul.msk.f32.gmra.mxu1 %vm64_vm0, %v37_v19 }
  0x4a   :  { %576 = vmatmul.msk.f32.gmra.mxu2 %vm64_vm0, %v41_v39  ;;  %580 = vmatmul.msk.f32.gmra.mxu3 %vm64_vm0, %v45_v40 }
  0x51   :  { %569 = vmatmul.msk.f32.gmra.mxu0 %vm64_vm0, %v34_v20  ;;  %573 = vmatmul.msk.f32.gmra.mxu1 %vm64_vm0, %v38_v36 }
  0x52   :  { %577 = vmatmul.msk.f32.gmra.mxu2 %vm64_vm0, %v42_v54  ;;  %581 = vmatmul.msk.f32.gmra.mxu3 %vm64_vm0, %v46_v55 }
  0x59   :  { %570 = vmatmul.msk.f32.gmra.mxu0 %vm64_vm0, %v35_v21  ;;  %574 = vmatmul.msk.f32.gmra.mxu1 %vm64_vm0, %v39_v45 }
  0x5a   :  { %578 = vmatmul.msk.f32.gmra.mxu2 %vm64_vm0, %v43_v3  ;;  %582 = vmatmul.msk.f32.gmra.mxu3 %vm64_vm0, %v47_v4 }
  0xbe   :  { %v178_v23 = vpop.f32.mrf.mxu0  ;;  %v190_v27 = vpop.f32.mrf.mxu1 }
  0xbf   :  { %v583_v30 = vadd.f32 -1.0, %v178_v23  ;;  %v587_v42 = vadd.f32 -1.0, %v190_v27 }
  0xc1   :  { %v347_v37 = vsel %vm315_vm4, %v583_v30, %v178_v23  ;;  %v351_v48 = vsel %vm319_vm10, %v587_v42, %v190_v27 }
  0xc2   :  { %vm363_vm9 = vcmp.gt.f32.partialorder %v347_v37, 0.5  ;;  %vm395_vm1 = vcmp.lt.f32.partialorder %v347_v37, 0.95  ;;  %vm367_vm7 = vcmp.gt.f32.partialorder %v351_v48, 0.5 }
  0xc3   :  { %vm379_vm15 = vmand %vm298_vm2, %vm363_vm9 }
  0xc4   :  { %vm879_vm6 = vmand %vm379_vm15, %vm395_vm1 }
  0xc5   :  { %v443_v62 = vsel %vm879_vm6, %v347_v37, 0.0  ;;  %v202_v13 = vpop.f32.mrf.mxu2  ;;  %v214_v14 = vpop.f32.mrf.mxu3 }
  0xc6   :  { %v181_v32 = vpop.f32.mrf.mxu0  ;;  %v193_v44 = vpop.f32.mrf.mxu1 }
  0xc7   :  { %v584_v34 = vadd.f32 -1.0, %v181_v32  ;;  %v588_v50 = vadd.f32 -1.0, %v193_v44 }
  0xc9   :  { %v348_v41 = vsel %vm316_vm5, %v584_v34, %v181_v32  ;;  %v352_v57 = vsel %vm862_vm14, %v588_v50, %v193_v44 }
  0xca   :  { %vm364_vm13 = vcmp.gt.f32.partialorder %v348_v41, 0.5  ;;  %vm396_vm5 = vcmp.lt.f32.partialorder %v348_v41, 0.95  ;;  %vm368_vm1 = vcmp.gt.f32.partialorder %v352_v57, 0.5  ;;  %vm400_vm6 = vcmp.lt.f32.partialorder %v352_v57, 0.95 }
  0xcb   :  { %vm380_vm4 = vmand %vm298_vm2, %vm364_vm13  ;;  %vm399_vm13 = vcmp.lt.f32.partialorder %v351_v48, 0.95 }
  0xcc   :  { %vm891_vm12 = vmand %vm380_vm4, %vm396_vm5 }
  0xcd   :  { %v444_v60 = vsel %vm891_vm12, %v348_v41, 0.0  ;;  %v205_v16 = vpop.f32.mrf.mxu2  ;;  %v217_v17 = vpop.f32.mrf.mxu3 }
  0xce   :  { %v184_v46 = vpop.f32.mrf.mxu0  ;;  %v510_v2 = vadd.f32 %v444_v60, %v443_v62  ;;  %v196_v12 = vpop.f32.mrf.mxu1 }
  0xcf   :  { %v585_v49 = vadd.f32 -1.0, %v184_v46 }
  0xd1   :  { %v349_v52 = vsel %vm850_vm11, %v585_v49, %v184_v46  ;;  %vm383_vm11 = vmand %vm298_vm2, %vm367_vm7 }
  0xd2   :  { %vm365_vm8 = vcmp.gt.f32.partialorder %v349_v52, 0.5  ;;  %vm397_vm10 = vcmp.lt.f32.partialorder %v349_v52, 0.95  ;;  %vm913_vm14 = vmand %vm383_vm11, %vm399_vm13 }
  0xd3   :  { %vm381_vm9 = vmand %vm298_vm2, %vm365_vm8  ;;  %v447_v8 = vsel %vm913_vm14, %v351_v48, 0.0 }
  0xd4   :  { %vm901_vm15 = vmand %vm381_vm9, %vm397_vm10 }
  0xd5   :  { %v445_v63 = vsel %vm901_vm15, %v349_v52, 0.0  ;;  %vm384_vm7 = vmand %vm298_vm2, %vm368_vm1  ;;  %v208_v20 = vpop.f32.mrf.mxu2  ;;  %v220_v21 = vpop.f32.mrf.mxu3 }
  0xd6   :  { %v187_v59 = vpop.f32.mrf.mxu0  ;;  %v511_v5 = vadd.f32 %v510_v2, %v445_v63  ;;  %vm416_vm9 = vmand %vm384_vm7, %vm400_vm6  ;;  %v199_v15 = vpop.f32.mrf.mxu1 }
  0xd7   :  { %v586_v61 = vadd.f32 -1.0, %v187_v59  ;;  %v448_v10 = vsel %vm416_vm9, %v352_v57, 0.0 }
  0xd9   :  { %v350_v0 = vsel %vm870_vm3, %v586_v61, %v187_v59 }
  0xda   :  { %vm366_vm4 = vcmp.gt.f32.partialorder %v350_v0, 0.5  ;;  %vm398_vm5 = vcmp.lt.f32.partialorder %v350_v0, 0.95 }
  0xdb   :  { %vm382_vm3 = vmand %vm298_vm2, %vm366_vm4 }
  0xdc   :  { %vm414_vm8 = vmand %vm382_vm3, %vm398_vm5 }
  0xdd   :  { %v446_v6 = vsel %vm414_vm8, %v350_v0, 0.0  ;;  %v211_v26 = vpop.f32.mrf.mxu2  ;;  %v223_v27 = vpop.f32.mrf.mxu3 }
  0xde   :  { %v512_v7 = vadd.f32 %v511_v5, %v446_v6 }
  0xe0   :  { %v513_v9 = vadd.f32 %v512_v7, %v447_v8 }
  0xe2   :  { %v514_v11 = vadd.f32 %v513_v9, %v448_v10 }
  0xe4   :  { %525 = vadd.xlane.f32.xlu0 %v514_v11 }
 0x157   :  { %v526_v18 = vpop.xlane.xlu0 %525 }
 0x158   :  { %v527_v19 = vrot.slane %v526_v18, 4 }
 0x15a   :  { %v528_v22 = vadd.f32 %v527_v19, %v526_v18 }
 0x15c   :  { %v529_v23 = vrot.slane %v528_v22, 2 }
 0x15e   :  { %v530_v24 = vadd.f32 %v529_v23, %v528_v22 }
 0x160   :  { %v531_v25 = vrot.slane %v530_v24, 1 }
 0x162   :  { %v532_v28 = vadd.f32 %v531_v25, %v530_v24 }
 0x164   :  { %647 = vpush %v532_v28 }
 0x195   :  { %s648_s17 = spop %647 }
 0x196   :  { %535 = sst [smem:[#allocation3]] %s648_s17 }
 0x197   :  { %544 = dma.smem_to_hbm %s664_s18, 16, %s542_s1, [#allocation4]  }
 0x198   :  { %662 = dma.done.wait [#allocation4], 16  }
 0x199   :  { %663 = vsyncadd [#allocation4], 4294967280 }
 0x19a   :  { %549 = sfence }
 0x19b   :  { %550 = vsyncpa [#allocation4], 1 }

</bundles_post_ra>
